<compile_context>
chip_gen: v7x
topology: tpu7x:2x2x1
jax: 0.10.0
libtpu: 0.0.40
codegen_flags: <defaults>
</compile_context>

<pallas_src>
import functools

import jax
import jax.numpy as jnp
from jax.experimental import pallas as pl
from jax.experimental.pallas import tpu as pltpu

_VMEM_LIMIT = 48 * 1024 * 1024          # stay under v7x's 64 MiB / TensorCore
_RESIDENT_WEIGHT_BYTES = 4 * 1024 * 1024


def _round_up(x, m):
    return (x + m - 1) // m * m


# ----------------------------------------------------------------------------
# Matmul kernels (bf16 operands, fp32 MXU accumulation, optional tanh epilogue)
# ----------------------------------------------------------------------------
def _mm_resident_kernel(a_ref, b_ref, o_ref, *, activation):
    acc = jnp.dot(a_ref[...], b_ref[...], preferred_element_type=jnp.float32)
    if activation == "tanh":
        acc = jnp.tanh(acc)
    o_ref[...] = acc.astype(o_ref.dtype)


def _mm_tiled_kernel(a_ref, b_ref, o_ref, acc_ref, *, activation):
    @pl.when(pl.program_id(2) == 0)
    def _():
        acc_ref[...] = jnp.zeros_like(acc_ref)

    acc_ref[...] += jnp.dot(a_ref[...], b_ref[...],
                            preferred_element_type=jnp.float32)

    @pl.when(pl.program_id(2) == pl.num_programs(2) - 1)
    def _():
        acc = acc_ref[...]
        if activation == "tanh":
            acc = jnp.tanh(acc)
        o_ref[...] = acc.astype(o_ref.dtype)


def matmul_pallas(a, b, activation=None, out_dtype=jnp.float32):
    """(M,K) @ (K,N) on the MXU.  Small weights stay resident in VMEM."""
    M, K = a.shape
    K2, N = b.shape
    assert K == K2
    a = a.astype(jnp.bfloat16)
    b = b.astype(jnp.bfloat16)

    Kp_min = _round_up(K, 128)
    Np_min = _round_up(N, 128)

    if Kp_min * Np_min * 2 <= _RESIDENT_WEIGHT_BYTES:
        # Whole weight is a single VMEM block with a constant block index -> it
        # is fetched from HBM once and reused by every M tile (grid over M only,
        # no K reduction axis and no accumulator scratch needed).
        tm = min(512, _round_up(M, 8))
        Mp, Kp, Np = _round_up(M, tm), Kp_min, Np_min
        a_p = a if (Mp == M and Kp == K) else jnp.pad(a, ((0, Mp - M), (0, Kp - K)))
        b_p = b if (Kp == K and Np == N) else jnp.pad(b, ((0, Kp - K), (0, Np - N)))
        out = pl.pallas_call(
            functools.partial(_mm_resident_kernel, activation=activation),
            out_shape=jax.ShapeDtypeStruct((Mp, Np), out_dtype),
            grid_spec=pltpu.PrefetchScalarGridSpec(
                num_scalar_prefetch=0,
                grid=(Mp // tm,),
                in_specs=[pl.BlockSpec((tm, Kp), lambda i: (i, 0)),
                          pl.BlockSpec((Kp, Np), lambda i: (0, 0))],
                out_specs=pl.BlockSpec((tm, Np), lambda i: (i, 0))),
            compiler_params=pltpu.CompilerParams(
                dimension_semantics=("parallel",),
                vmem_limit_bytes=_VMEM_LIMIT),
        )(a_p, b_p)
    else:
        if M <= 256:
            # tiny-M layers (conv1/2/3): few wide grid steps instead of many
            tm = _round_up(M, 8)
            tk = min(1024, Kp_min)
            tn = min(4096, Np_min)
        else:
            tm = min(256, _round_up(M, 8))
            tk = min(512, Kp_min)
            tn = min(512, Np_min)
        Mp, Kp, Np = _round_up(M, tm), _round_up(K, tk), _round_up(N, tn)
        a_p = a if (Mp == M and Kp == K) else jnp.pad(a, ((0, Mp - M), (0, Kp - K)))
        b_p = b if (Kp == K and Np == N) else jnp.pad(b, ((0, Kp - K), (0, Np - N)))
        out = pl.pallas_call(
            functools.partial(_mm_tiled_kernel, activation=activation),
            out_shape=jax.ShapeDtypeStruct((Mp, Np), out_dtype),
            grid_spec=pltpu.PrefetchScalarGridSpec(
                num_scalar_prefetch=0,
                grid=(Mp // tm, Np // tn, Kp // tk),
                in_specs=[pl.BlockSpec((tm, tk), lambda i, j, k: (i, k)),
                          pl.BlockSpec((tk, tn), lambda i, j, k: (k, j))],
                out_specs=pl.BlockSpec((tm, tn), lambda i, j, k: (i, j)),
                scratch_shapes=[pltpu.VMEM((tm, tn), jnp.float32)]),
            compiler_params=pltpu.CompilerParams(
                dimension_semantics=("parallel", "parallel", "arbitrary"),
                vmem_limit_bytes=_VMEM_LIMIT),
        )(a_p, b_p)

    if (Mp, Np) != (M, N):
        out = out[:M, :N]
    return out


# ----------------------------------------------------------------------------
# BatchNorm (batch statistics) + ReLU, two-stage pipeline
# ----------------------------------------------------------------------------
def _bn_stats_kernel(x_ref, s_ref, ss_ref, sacc_ref, ssacc_ref):
    @pl.when(pl.program_id(1) == 0)
    def _():
        sacc_ref[...] = jnp.zeros_like(sacc_ref)
        ssacc_ref[...] = jnp.zeros_like(ssacc_ref)

    x = x_ref[...].astype(jnp.float32)
    sacc_ref[...] += jnp.sum(x, axis=0, keepdims=True)
    ssacc_ref[...] += jnp.sum(x * x, axis=0, keepdims=True)

    @pl.when(pl.program_id(1) == pl.num_programs(1) - 1)
    def _():
        s_ref[...] = sacc_ref[...]
        ss_ref[...] = ssacc_ref[...]


def _bn_apply_kernel(x_ref, s_ref, ss_ref, g_ref, b_ref, o_ref, *, eps, inv_count):
    x = x_ref[...].astype(jnp.float32)
    mean = s_ref[...] * inv_count
    var = ss_ref[...] * inv_count - mean * mean          # biased (training mode)
    y = (x - mean) * jax.lax.rsqrt(var + eps) * g_ref[...] + b_ref[...]
    o_ref[...] = jnp.maximum(y, 0.0).astype(o_ref.dtype)


def bn_relu_pallas(x, gamma, beta, eps=0.8, out_dtype=jnp.bfloat16):
    """BatchNorm (batch stats, biased variance) + ReLU over x:(tokens, channels)."""
    M, N = x.shape
    assert M % 8 == 0 and N % 128 == 0
    tn = N if N <= 512 else (512 if N % 512 == 0 else 128)
    tm = M
    while tm > 1024 and tm % 2 == 0:
        tm //= 2
    assert M % tm == 0 and N % tn == 0
    g = gamma.reshape(1, N).astype(jnp.float32)
    b = beta.reshape(1, N).astype(jnp.float32)

    # stage 1: per-channel sum / sum-of-squares (single pass over x)
    s, ss = pl.pallas_call(
        _bn_stats_kernel,
        out_shape=(jax.ShapeDtypeStruct((1, N), jnp.float32),
                   jax.ShapeDtypeStruct((1, N), jnp.float32)),
        grid_spec=pltpu.PrefetchScalarGridSpec(
            num_scalar_prefetch=0,
            grid=(N // tn, M // tm),
            in_specs=[pl.BlockSpec((tm, tn), lambda j, m: (m, j))],
            out_specs=(pl.BlockSpec((1, tn), lambda j, m: (0, j)),
                       pl.BlockSpec((1, tn), lambda j, m: (0, j))),
            scratch_shapes=[pltpu.VMEM((1, tn), jnp.float32),
                            pltpu.VMEM((1, tn), jnp.float32)]),
        compiler_params=pltpu.CompilerParams(
            dimension_semantics=("parallel", "arbitrary"),
            vmem_limit_bytes=_VMEM_LIMIT),
    )(x)

    # stage 2: normalize + ReLU (fully parallel over token and channel tiles)
    return pl.pallas_call(
        functools.partial(_bn_apply_kernel, eps=eps, inv_count=1.0 / M),
        out_shape=jax.ShapeDtypeStruct((M, N), out_dtype),
        grid_spec=pltpu.PrefetchScalarGridSpec(
            num_scalar_prefetch=0,
            grid=(M // tm, N // tn),
            in_specs=[pl.BlockSpec((tm, tn), lambda i, j: (i, j)),
                      pl.BlockSpec((1, tn), lambda i, j: (0, j)),
                      pl.BlockSpec((1, tn), lambda i, j: (0, j)),
                      pl.BlockSpec((1, tn), lambda i, j: (0, j)),
                      pl.BlockSpec((1, tn), lambda i, j: (0, j))],
            out_specs=pl.BlockSpec((tm, tn), lambda i, j: (i, j))),
        compiler_params=pltpu.CompilerParams(
            dimension_semantics=("parallel", "parallel"),
            vmem_limit_bytes=_VMEM_LIMIT),
    )(x, s, ss, g, b)


# ----------------------------------------------------------------------------
# ConvTranspose2d(k=4, s=2, p=1) via subpixel / phase decomposition
# ----------------------------------------------------------------------------
def deconv_s2(x, w, activation=None, out_dtype=jnp.bfloat16):
    """x: (B,H,W,Cin) NHWC, w: (Cin,Cout,4,4) PyTorch ConvTranspose layout.

    Each 2x2 window of the 1-padded input produces the 2x2 block of output
    phases (qy, qx) via a single (4*Cin, 4*Cout) matmul; a pixel-shuffle plus
    a 1-pixel crop assembles the (B, 2H, 2W, Cout) output.  Compared to the
    zero-inserted im2col this is 4x fewer FLOPs and ~16x less A traffic.
    """
    B, H, W, Cin = x.shape
    Cout = w.shape[1]

    x_p = jnp.pad(x, ((0, 0), (1, 1), (1, 1), (0, 0))).astype(jnp.bfloat16)
    # TODO(synk): the 4 shifted tap views are still materialized in HBM (small
    # now, ~4x input size in bf16); fusing them into the matmul via manual DMA
    # would remove that last copy.
    taps = [x_p[:, dy:dy + H + 1, dx:dx + W + 1, :]
            for dy in (0, 1) for dx in (0, 1)]
    a = jnp.concatenate(taps, axis=-1).reshape(B * (H + 1) * (W + 1), 4 * Cin)

    # kernel tap used by (window offset d, output phase q):  k = 2 - 2*d + q
    tap = jnp.array([[2, 3], [0, 1]], dtype=jnp.int32)        # [d, q] -> k
    wt = jnp.transpose(w, (2, 3, 0, 1))                       # (ky, kx, Cin, Cout)
    wph = wt[tap][:, :, tap]                                  # (dy,qy,dx,qx,Cin,Cout)
    w_mat = jnp.transpose(wph, (0, 2, 4, 1, 3, 5)).reshape(4 * Cin, 4 * Cout)

    r = matmul_pallas(a, w_mat, activation=activation, out_dtype=out_dtype)
    r = r.reshape(B, H + 1, W + 1, 2, 2, Cout)                # (..., qy, qx, Cout)
    r = jnp.transpose(r, (0, 1, 3, 2, 4, 5)).reshape(B, 2 * H + 2, 2 * W + 2, Cout)
    return r[:, 1:2 * H + 1, 1:2 * W + 1, :]


def deconv_bn_relu(x, w, gamma, beta):
    y = deconv_s2(x, w)
    B, OH, OW, C = y.shape
    y = bn_relu_pallas(y.reshape(B * OH * OW, C), gamma, beta)
    return y.reshape(B, OH, OW, C)


def _deconv_reference(x, w):
    """Pure-XLA reference for ConvTranspose2d(k=4, s=2, p=1), NHWC in/out."""
    w_flip = jnp.transpose(w[:, :, ::-1, ::-1], (2, 3, 0, 1))   # HWIO, flipped
    return jax.lax.conv_general_dilated(
        x, w_flip, window_strides=(1, 1), padding=((2, 2), (2, 2)),
        lhs_dilation=(2, 2), dimension_numbers=("NHWC", "HWIO", "NHWC"))


# ----------------------------------------------------------------------------
# Full Gen forward
# ----------------------------------------------------------------------------
def gen_forward(params, z, labels):
    B = z.shape[0]
    z = z.reshape(B, 100)                              # (B,100,1,1) -> (B,100)
    emb = params["embed"][labels]                      # embedding gather (B,100)
    x = jnp.concatenate([z, emb], axis=1)              # (B, 200)

    # conv1: ConvTranspose2d(200, 2048, 4, 1, 0) on 1x1 spatial == pure matmul
    w1 = params["w1"]                                  # (200, 2048, 4, 4)
    w1m = jnp.transpose(w1, (0, 2, 3, 1)).reshape(200, 16 * 2048)
    h = matmul_pallas(x, w1m, out_dtype=jnp.bfloat16)  # (B, 16*2048), NHWC order
    h = bn_relu_pallas(h.reshape(B * 16, 2048), params["g1"], params["b1"])
    x = h.reshape(B, 4, 4, 2048)

    # conv2 + bn + relu
    x = deconv_bn_relu(x, params["w2"], params["g2"], params["b2"])   # (B,8,8,1024)

    # dropout2d(p=0.25), training mode, whole-channel masks (deterministic key)
    keep = jax.random.bernoulli(jax.random.PRNGKey(42), 0.75,
                                (B, 1, 1, x.shape[-1]))
    x = x * (keep.astype(jnp.float32) / 0.75)

    x = deconv_bn_relu(x, params["w3"], params["g3"], params["b3"])   # (B,16,16,512)
    x = deconv_bn_relu(x, params["w4"], params["g4"], params["b4"])   # (B,32,32,256)
    x = deconv_bn_relu(x, params["w5"], params["g5"], params["b5"])   # (B,64,64,128)

    # conv6 + tanh (fused in the matmul epilogue)
    x = deconv_s2(x, params["w6"], activation="tanh",
                  out_dtype=jnp.float32)                              # (B,128,128,3)

    return jnp.transpose(x, (0, 3, 1, 2))                             # NCHW


def init_params(key):
    ks = jax.random.split(key, 8)
    def w(k, cin, cout):
        return 0.02 * jax.random.normal(k, (cin, cout, 4, 4), jnp.float32)
    chans = [2048, 1024, 512, 256, 128]
    params = {
        "embed": 0.05 * jax.random.normal(ks[0], (4, 100), jnp.float32),
        "w1": w(ks[1], 200, 2048),
        "w2": w(ks[2], 2048, 1024),
        "w3": w(ks[3], 1024, 512),
        "w4": w(ks[4], 512, 256),
        "w5": w(ks[5], 256, 128),
        "w6": w(ks[6], 128, 3),
    }
    for i, c in enumerate(chans, start=1):
        params[f"g{i}"] = jnp.ones((c,), jnp.float32)
        params[f"b{i}"] = jnp.zeros((c,), jnp.float32)
    return params


if __name__ == "__main__":
    # --- small self-checks of the Pallas lowerings against XLA references ---
    k1, k2, k3 = jax.random.split(jax.random.PRNGKey(7), 3)
    xtest = jax.random.normal(k1, (1, 4, 4, 8), jnp.float32)
    wtest = jax.random.normal(k2, (8, 16, 4, 4), jnp.float32)
    got = jax.jit(lambda a, b: deconv_s2(a, b, out_dtype=jnp.float32))(xtest, wtest)
    ref = _deconv_reference(xtest, wtest)
    tol = 0.03 * float(jnp.max(jnp.abs(ref))) + 1e-2     # bf16 operand rounding
    assert float(jnp.max(jnp.abs(got - ref))) <= tol, "deconv mismatch"

    xb = jax.random.normal(k3, (64, 256), jnp.float32)
    gotb = jax.jit(lambda a, g, c: bn_relu_pallas(a, g, c, out_dtype=jnp.float32))(
        xb, jnp.ones((256,), jnp.float32), jnp.zeros((256,), jnp.float32))
    refb = jnp.maximum((xb - xb.mean(axis=0)) *
                       jax.lax.rsqrt(xb.var(axis=0) + 0.8), 0.0)
    assert float(jnp.max(jnp.abs(gotb - refb))) <= 5e-2, "bn mismatch"

    # --- full Gen forward ---
    key = jax.random.PRNGKey(0)
    pkey, zkey = jax.random.split(key)
    params = init_params(pkey)

    B = 2
    z = jax.random.normal(zkey, (B, 100, 1, 1), jnp.float32)   # PyTorch-style noise
    labels = jnp.array([1, 3], dtype=jnp.int32)

    fwd = jax.jit(gen_forward)
    out = jax.block_until_ready(fwd(params, z, labels))

    assert out.shape == (B, 3, 128, 128), out.shape
    assert bool(jnp.all(jnp.isfinite(out)))
    assert bool(jnp.all(jnp.abs(out) <= 1.0 + 1e-6))  # tanh range
    print("KERNEL_OK")
</pallas_src>

<mosaic_0001>
module attributes {stable_mosaic.version = 11 : i64} {
  func.func @_mm_resident_kernel(%arg0: i32, %arg1: memref<32x128xbf16, #tpu.memory_space<vmem>>, %arg2: memref<128x128xbf16, #tpu.memory_space<vmem>>, %arg3: memref<32x128xf32, #tpu.memory_space<vmem>>) attributes {dimension_semantics = [#tpu.dimension_semantics<parallel>], iteration_bounds = array<i64: 1>, scalar_prefetch = 0 : i64, scratch_operands = 0 : i64, tpu.core_type = #tpu.core_type<tc>, window_params = [{transform_indices = @transform_0, window_bounds = array<i64: 32, 128>}, {pipeline_mode = #tpu.pipeline_mode<synchronous>, transform_indices = @transform_1, window_bounds = array<i64: 128, 128>}, {transform_indices = @transform_2, window_bounds = array<i64: 32, 128>}]} {
    %c0 = arith.constant 0 : index
    %c0_0 = arith.constant 0 : index
    %0 = vector.load %arg1[%c0, %c0_0] : memref<32x128xbf16, #tpu.memory_space<vmem>>, vector<32x128xbf16>
    %c0_1 = arith.constant 0 : index
    %c0_2 = arith.constant 0 : index
    %1 = vector.load %arg2[%c0_1, %c0_2] : memref<128x128xbf16, #tpu.memory_space<vmem>>, vector<128x128xbf16>
    %cst = arith.constant dense<0.000000e+00> : vector<32x128xf32>
    %2 = tpu.matmul %0, %1, %cst {dimension_numbers = #tpu.dot_dimension_numbers<[1], [0], [0], [1], [0, 0, 1, 1], [], []>} : vector<32x128xbf16>, vector<128x128xbf16>, vector<32x128xf32> -> vector<32x128xf32>
    %c0_3 = arith.constant 0 : index
    %c0_4 = arith.constant 0 : index
    %3 = vector.load %arg3[%c0_3, %c0_4] : memref<32x128xf32, #tpu.memory_space<vmem>>, vector<32x128xf32>
    tpu.vector_store %arg3[%c0_3, %c0_4], %2 {strides = array<i32>} : memref<32x128xf32, #tpu.memory_space<vmem>>, vector<32x128xf32>,
    return
  }
  func.func @transform_0(%arg0: i32) -> (i32, i32) {
    %c0_i32 = arith.constant 0 : i32
    %c0_i32_0 = arith.constant 0 : i32
    return %arg0, %c0_i32 : i32, i32
  }
  func.func @transform_1(%arg0: i32) -> (i32, i32) {
    %c0_i32 = arith.constant 0 : i32
    %c0_i32_0 = arith.constant 0 : i32
    %c0_i32_1 = arith.constant 0 : i32
    return %c0_i32, %c0_i32_0 : i32, i32
  }
  func.func @transform_2(%arg0: i32) -> (i32, i32) {
    %c0_i32 = arith.constant 0 : i32
    %c0_i32_0 = arith.constant 0 : i32
    return %arg0, %c0_i32 : i32, i32
  }
}

</mosaic_0001>

<bundles_post_ra>
// kernel: _lambda_.1
= control target key start
LH: loop header
LB: loop body
LE: loop exit
PB: predicated region body
PF: predicated region fallthrough
CT: control target
= control target key end

     0   :  { %s256_s1 = inlined_call_operand.vmem [shape: bf16[128,128], index: 1, kind: input, shape index: {}]   ;;  %s257_s0 = inlined_call_operand.vmem [shape: bf16[32,128], index: 0, kind: input, shape index: {}]   ;;  %s258_s2 = inlined_call_operand.vmem [shape: f32[32,128], index: 2, kind: output, shape index: {}]  }
   0x1   :  { %v189_v0 = vld [vmem:[%s256_s1] sm:$0xff]   ;;  %v190_v1 = vld [vmem:[%s256_s1 + $0x8] sm:$0xff]   ;;  %v191_v2 = vld [vmem:[%s256_s1 + $0x10] sm:$0xff]  }
   0x2   :  { %169 = vmatprep.subr.bf16.mxu0 %v189_v0  ;;  %v192_v3 = vld [vmem:[%s256_s1 + $0x18] sm:$0xff]   ;;  %v197_v4 = vld [vmem:[%s257_s0] sm:$0xff]   ;;  %v194_v6 = vld [vmem:[%s256_s1 + $0x28] sm:$0xff]  }
   0x3   :  { %170 = vmatpush3.bf16.msra.mxu0 %v189_v0  ;;  %185 = vmatprep.mubr.bf16.mxu0 %v197_v4  ;;  %v193_v5 = vld [vmem:[%s256_s1 + $0x20] sm:$0xff]   ;;  %v195_v7 = vld [vmem:[%s256_s1 + $0x30] sm:$0xff]   ;;  %v196_v8 = vld [vmem:[%s256_s1 + $0x38] sm:$0xff]  }
   0x4   :  { %171 = vmatprep.subr.bf16.mxu0 %v190_v1  ;;  %v198_v9 = vld [vmem:[%s257_s0 + $0x8] sm:$0xff]  }
   0x7   :  { %172 = vmatpush3.bf16.msra.mxu0 %v190_v1 }
   0x8   :  { %173 = vmatprep.subr.bf16.mxu0 %v191_v2 }
   0xb   :  { %174 = vmatpush3.bf16.msra.mxu0 %v191_v2 }
   0xc   :  { %175 = vmatprep.subr.bf16.mxu0 %v192_v3 }
   0xf   :  { %176 = vmatpush3.bf16.msra.mxu0 %v192_v3 }
  0x10   :  { %177 = vmatprep.subr.bf16.mxu0 %v193_v5 }
  0x13   :  { %178 = vmatpush3.bf16.msra.mxu0 %v193_v5 }
  0x14   :  { %179 = vmatprep.subr.bf16.mxu0 %v194_v6 }
  0x17   :  { %180 = vmatpush3.bf16.msra.mxu0 %v194_v6 }
  0x18   :  { %181 = vmatprep.subr.bf16.mxu0 %v195_v7 }
  0x1b   :  { %182 = vmatpush3.bf16.msra.mxu0 %v195_v7 }
  0x1c   :  { %183 = vmatprep.subr.bf16.mxu0 %v196_v8 }
  0x1f   :  { %184 = vmatpush3.bf16.msra.mxu0 %v196_v8 }
  0x22   :  { %186 = vmatmul.mubr.bf16.vlgmr.msra.gmra.mrb[0].mxu0 %v198_v9 }
  0xf5   :  { %v187_v10 = vpop.f32.mrb[0].mxu0 }
  0xf6   :  { %143 = vst [vmem:[%s258_s2 + $0x10] sm:$0xff] %v187_v10  ;;  %v126_v11 = vpop.f32.mrb[1].mxu0 }
  0xf7   :  { %141 = vst [vmem:[%s258_s2] sm:$0xff] %v126_v11  ;;  %v188_v12 = vpop.f32.mrb[2].mxu0 }
  0xf8   :  { %144 = vst [vmem:[%s258_s2 + $0x18] sm:$0xff] %v188_v12  ;;  %v129_v13 = vpop.f32.mrb[3].mxu0 }
  0xf9   :  { %142 = vst [vmem:[%s258_s2 + $0x8] sm:$0xff] %v129_v13 }

</bundles_post_ra>
